<compile_context>
chip_gen: v7x
topology: tpu7x:2x2x1
jax: 0.10.0
libtpu: 0.0.40
codegen_flags: <defaults>
</compile_context>

<pallas_src>
from functools import partial

import jax
import jax.numpy as jnp
from jax.experimental import pallas as pl
from jax.experimental.pallas import tpu as pltpu


# ------------------------------- fused kernel ------------------------------- #

def conv_dy_kernel(y_ref, x_ref, w1_ref, b1_ref, w2_ref, b2_ref, dynw_ref,
                   out_ref, patches_ref, *,
                   tb, cin, k, img_w, qc, dynamic_number, delta_inv):
    """One batch tile (TB samples) per grid step.

    y_ref:       [TB, Cin, HWy]   attention input (flattened spatial)
    x_ref:       [TB, Cin, Qx]    conv input (flattened spatial, zero-padded lanes)
    w1/b1/w2/b2:                  attention MLP params (VMEM-resident)
    dynw_ref:    [D, Cout, CKK]   weight banks, CKK ordered (kh, kw, c) (resident)
    out_ref:     [TB, Cout, Qc]   lane-dense flat conv output (Qc = round_up(Ho*W, 128))
    patches_ref: [TB, CKK, Qc]    VMEM scratch: in-kernel im2col
    """
    # ---- attention branch (fused): global avg-pool + MLP + (1/delta) + softmax ----
    pooled = jnp.mean(y_ref[...], axis=-1)                                   # [TB, Cin]
    h = jnp.dot(pooled, w1_ref[...], preferred_element_type=jnp.float32) + b1_ref[...]
    h = jnp.maximum(h, 0.0)                                                  # ReLU
    logits = (jnp.dot(h, w2_ref[...], preferred_element_type=jnp.float32)
              + b2_ref[...]) * delta_inv
    logits = logits - jnp.max(logits, axis=-1, keepdims=True)                # stable softmax
    e = jnp.exp(logits)
    attn = e / jnp.sum(e, axis=-1, keepdims=True)                            # [TB, D]

    # ---- in-kernel im2col: shifted lane slices of the flattened input -----------
    # patches[b, kk*Cin + c, q] = x[b, c, q + kh*W + kw]  with  kk = kh*K + kw.
    # Valid output positions q = ho*W + wo (ho < Ho, wo < Wo) only ever read real image
    # data; the zero-padded tail of x only feeds positions the wrapper discards.
    for kk in range(k * k):
        s = (kk // k) * img_w + (kk % k)
        patches_ref[:, kk * cin:(kk + 1) * cin, :] = x_ref[:, :, s:s + qc]

    # ---- per-sample: mix the D weight banks with attention, then one MXU matmul ----
    # Static unroll: tb is small (<= 8).  TODO(synk): switch to lax.fori_loop(unroll=True)
    # if TB is ever raised past ~8 so per-iteration live ranges stay bounded.
    for b in range(tb):
        a = attn[b:b + 1, :]                                                 # [1, D]
        mixed = a[:, 0:1] * dynw_ref[0]                                      # [Cout, CKK]
        for d in range(1, dynamic_number):
            mixed = mixed + a[:, d:d + 1] * dynw_ref[d]
        # Lane-dense conv-as-matmul: [Cout, CKK] @ [CKK, Qc] -> [Cout, Qc]
        out_ref[b] = jnp.dot(mixed, patches_ref[b],
                             preferred_element_type=jnp.float32)


# -------------------------------- JAX wrapper -------------------------------- #

def _round_up(n, m):
    return ((n + m - 1) // m) * m


def _largest_divisor_leq(n, cap):
    d = max(1, min(n, cap))
    while n % d:
        d -= 1
    return d


@partial(jax.jit, static_argnames=("kernel_size", "dynamic_number", "delta"))
def conv_dy2d_forward(x, y, params, *, kernel_size, dynamic_number, delta):
    B, Cin, H, W = x.shape
    K = kernel_size
    D = dynamic_number
    Cout = params["dyn_w"].shape[1]
    mid = params["w1"].shape[1]
    Ho, Wo = H - K + 1, W - K + 1
    CKK = Cin * K * K
    HWy = y.shape[2] * y.shape[3]

    # Flat spatial extents (lane counts):
    #   Qc: output positions computed per sample (>= Ho*W, 128-multiple -> unmasked vst)
    #   Qx: input lanes so every shifted slice [s, s+Qc) stays in-bounds (zero padded)
    Qc = _round_up(Ho * W, 128)
    s_max = (K - 1) * W + (K - 1)
    Qx = _round_up(Qc + s_max, 128)

    x_flat = x.reshape(B, Cin, H * W).astype(jnp.float32)
    x_flat = jnp.pad(x_flat, ((0, 0), (0, 0), (0, Qx - H * W)))              # zero tail
    y_flat = y.reshape(B, y.shape[1], HWy).astype(jnp.float32)

    # Weight banks with the CKK axis ordered (kh, kw, c) to match the in-kernel im2col.
    dynw = params["dyn_w"].astype(jnp.float32)
    dynw = dynw.transpose(0, 1, 3, 4, 2).reshape(D, Cout, CKK)

    # Batch tile: cap by a VMEM budget; keep >= 2 grid steps when B is even so the
    # "parallel" batch axis shards across both TensorCores on v7x (single-TC v5e/v6e
    # only pay one extra ~0.35us step for this).
    per_sample_bytes = 4 * (2 * Cin * Qx + 2 * Cin * HWy + 2 * Cout * Qc + CKK * Qc)
    tb_cap = max(1, (24 * 1024 * 1024) // per_sample_bytes)
    if B % 2 == 0:
        tb_cap = min(tb_cap, B // 2)
    TB = _largest_divisor_leq(B, tb_cap)
    grid_b = B // TB

    flops = (2 * B * Cout * CKK * Qc            # conv matmuls
             + 2 * B * D * Cout * CKK           # weight-bank mixing
             + 2 * B * (Cin * mid + mid * D))   # attention MLP
    bytes_accessed = 4 * (B * Cin * (Qx + HWy) + B * Cout * Qc
                          + D * Cout * CKK + Cin * mid + mid * D + mid + D)

    out_flat = pl.pallas_call(
        partial(conv_dy_kernel, tb=TB, cin=Cin, k=K, img_w=W, qc=Qc,
                dynamic_number=D, delta_inv=1.0 / float(delta)),
        out_shape=jax.ShapeDtypeStruct((B, Cout, Qc), jnp.float32),
        grid=(grid_b,),
        in_specs=[
            pl.BlockSpec((TB, Cin, HWy), lambda i: (i, 0, 0)),               # y tile
            pl.BlockSpec((TB, Cin, Qx), lambda i: (i, 0, 0)),                # x tile
            pl.BlockSpec((Cin, mid), lambda i: (0, 0)),                      # w1 (resident)
            pl.BlockSpec((1, mid), lambda i: (0, 0)),                        # b1
            pl.BlockSpec((mid, D), lambda i: (0, 0)),                        # w2
            pl.BlockSpec((1, D), lambda i: (0, 0)),                          # b2
            pl.BlockSpec((D, Cout, CKK), lambda i: (0, 0, 0)),               # weight banks
        ],
        out_specs=pl.BlockSpec((TB, Cout, Qc), lambda i: (i, 0, 0)),
        scratch_shapes=[pltpu.VMEM((TB, CKK, Qc), jnp.float32)],             # im2col scratch
        compiler_params=pltpu.CompilerParams(
            dimension_semantics=("parallel",),          # batch tiles shard across v7x TCs
            vmem_limit_bytes=32 * 1024 * 1024),         # tiny tiles; safe on v5e/v6e/v7x
        cost_estimate=pl.CostEstimate(flops=flops, transcendentals=B * D,
                                      bytes_accessed=bytes_accessed),
    )(y_flat, x_flat, params["w1"], params["b1"], params["w2"], params["b2"], dynw)

    # Flat -> NCHW: keep the first Ho rows of W-wide lanes, then drop the last K-1 cols.
    out = out_flat[:, :, :Ho * W].reshape(B, Cout, Ho, W)[:, :, :, :Wo]
    return out


# --------------------------------- reference --------------------------------- #

def conv_dy2d_reference(x, y, params, *, kernel_size, dynamic_number, delta):
    """Plain-JAX reference mirroring the PyTorch forward (no dynamic bias)."""
    pooled = y.mean(axis=(2, 3))
    h = jnp.maximum(pooled @ params["w1"] + params["b1"], 0.0)
    logits = (h @ params["w2"] + params["b2"]) * (1.0 / float(delta))
    a = jax.nn.softmax(logits, axis=-1)                                      # [B, D]
    w_mix = jnp.einsum("bd,doihw->boihw", a, params["dyn_w"])                # [B,Co,Ci,K,K]
    outs = []
    for i in range(x.shape[0]):
        outs.append(jax.lax.conv_general_dilated(
            x[i:i + 1], w_mix[i], window_strides=(1, 1), padding="VALID",
            dimension_numbers=("NCHW", "OIHW", "NCHW"),
            precision=jax.lax.Precision.HIGHEST)[0])
    return jnp.stack(outs, axis=0)


# ------------------------------------ main ------------------------------------ #

if __name__ == "__main__":
    # Small shapes consistent with the PyTorch module defaults.
    B, Cin, Cout, H, W = 8, 8, 8, 16, 16
    K, D, delta = 3, 4, 30
    mid = Cin // 4

    key = jax.random.PRNGKey(0)
    k_x, k_y, k_w1, k_b1, k_w2, k_b2, k_dw, k_db = jax.random.split(key, 8)

    x = jax.random.normal(k_x, (B, Cin, H, W), dtype=jnp.float32)
    y = jax.random.normal(k_y, (B, Cin, H, W), dtype=jnp.float32)

    params = {
        # nn.Linear(Cin, mid): stored pre-transposed as [Cin, mid]
        "w1": 0.1 * jax.random.normal(k_w1, (Cin, mid), dtype=jnp.float32),
        "b1": 0.1 * jax.random.normal(k_b1, (1, mid), dtype=jnp.float32),
        # nn.Linear(mid, D): stored pre-transposed as [mid, D]
        "w2": 0.1 * jax.random.normal(k_w2, (mid, D), dtype=jnp.float32),
        "b2": 0.1 * jax.random.normal(k_b2, (1, D), dtype=jnp.float32),
        # dynamic conv weight banks [D, Cout, Cin, K, K]
        "dyn_w": jax.random.normal(k_dw, (D, Cout, Cin, K, K), dtype=jnp.float32),
        # created for fidelity with __init__, but unused (see NOTE at top):
        "dyn_b": jax.random.normal(k_db, (D, Cout), dtype=jnp.float32),
    }

    out = conv_dy2d_forward(x, y, params, kernel_size=K,
                            dynamic_number=D, delta=delta)
    out = jax.block_until_ready(out)

    ref = conv_dy2d_reference(x, y, params, kernel_size=K,
                              dynamic_number=D, delta=delta)
    assert out.shape == (B, Cout, H - K + 1, W - K + 1), out.shape
    assert jnp.allclose(out, ref, atol=1e-3, rtol=1e-3), \
        float(jnp.max(jnp.abs(out - ref)))

    print("KERNEL_OK")
</pallas_src>

<mosaic_0001>
module attributes {stable_mosaic.version = 11 : i64} {
  func.func @conv_dy_kernel(%arg0: i32, %arg1: memref<4x8x256xf32, #tpu.memory_space<vmem>>, %arg2: memref<4x8x384xf32, #tpu.memory_space<vmem>>, %arg3: memref<8x2xf32, #tpu.memory_space<vmem>>, %arg4: memref<1x2xf32, #tpu.memory_space<vmem>>, %arg5: memref<2x4xf32, #tpu.memory_space<vmem>>, %arg6: memref<1x4xf32, #tpu.memory_space<vmem>>, %arg7: memref<4x8x72xf32, #tpu.memory_space<vmem>>, %arg8: memref<4x8x256xf32, #tpu.memory_space<vmem>>, %arg9: memref<4x72x256xf32, #tpu.memory_space<vmem>>) attributes {dimension_semantics = [#tpu.dimension_semantics<parallel>], iteration_bounds = array<i64: 2>, scalar_prefetch = 0 : i64, scratch_operands = 1 : i64, tpu.core_type = #tpu.core_type<tc>, window_params = [{transform_indices = @transform_0, window_bounds = array<i64: 4, 8, 256>}, {transform_indices = @transform_1, window_bounds = array<i64: 4, 8, 384>}, {pipeline_mode = #tpu.pipeline_mode<synchronous>, transform_indices = @transform_2, window_bounds = array<i64: 8, 2>}, {pipeline_mode = #tpu.pipeline_mode<synchronous>, transform_indices = @transform_3, window_bounds = array<i64: 1, 2>}, {pipeline_mode = #tpu.pipeline_mode<synchronous>, transform_indices = @transform_4, window_bounds = array<i64: 2, 4>}, {pipeline_mode = #tpu.pipeline_mode<synchronous>, transform_indices = @transform_5, window_bounds = array<i64: 1, 4>}, {pipeline_mode = #tpu.pipeline_mode<synchronous>, transform_indices = @transform_6, window_bounds = array<i64: 4, 8, 72>}, {transform_indices = @transform_7, window_bounds = array<i64: 4, 8, 256>}]} {
    %c0 = arith.constant 0 : index
    %c0_0 = arith.constant 0 : index
    %c0_1 = arith.constant 0 : index
    %0 = vector.load %arg1[%c0, %c0_0, %c0_1] : memref<4x8x256xf32, #tpu.memory_space<vmem>>, vector<4x8x256xf32>
    %cst = arith.constant dense<0.000000e+00> : vector<4x8xf32>
    %1 = vector.multi_reduction <add>, %0, %cst [2] : vector<4x8x256xf32> to vector<4x8xf32>
    %cst_2 = arith.constant 2.560000e+02 : f32
    %2 = vector.broadcast %cst_2 : f32 to vector<4x8xf32>
    %3 = arith.divf %1, %2 : vector<4x8xf32>
    %c0_3 = arith.constant 0 : index
    %c0_4 = arith.constant 0 : index
    %4 = vector.load %arg3[%c0_3, %c0_4] : memref<8x2xf32, #tpu.memory_space<vmem>>, vector<8x2xf32>
    %cst_5 = arith.constant dense<0.000000e+00> : vector<4x2xf32>
    %5 = tpu.matmul %3, %4, %cst_5 {dimension_numbers = #tpu.dot_dimension_numbers<[1], [0], [0], [1], [0, 0, 1, 1], [], []>} : vector<4x8xf32>, vector<8x2xf32>, vector<4x2xf32> -> vector<4x2xf32>
    %c0_6 = arith.constant 0 : index
    %c0_7 = arith.constant 0 : index
    %6 = vector.load %arg4[%c0_6, %c0_7] : memref<1x2xf32, #tpu.memory_space<vmem>>, vector<1x2xf32>
    %7 = vector.broadcast %6 : vector<1x2xf32> to vector<4x2xf32>
    %8 = arith.addf %5, %7 : vector<4x2xf32>
    %cst_8 = arith.constant 0.000000e+00 : f32
    %9 = vector.broadcast %cst_8 : f32 to vector<4x2xf32>
    %10 = arith.maximumf %8, %9 : vector<4x2xf32>
    %c0_9 = arith.constant 0 : index
    %c0_10 = arith.constant 0 : index
    %11 = vector.load %arg5[%c0_9, %c0_10] : memref<2x4xf32, #tpu.memory_space<vmem>>, vector<2x4xf32>
    %cst_11 = arith.constant dense<0.000000e+00> : vector<4x4xf32>
    %12 = tpu.matmul %10, %11, %cst_11 {dimension_numbers = #tpu.dot_dimension_numbers<[1], [0], [0], [1], [0, 0, 1, 1], [], []>} : vector<4x2xf32>, vector<2x4xf32>, vector<4x4xf32> -> vector<4x4xf32>
    %c0_12 = arith.constant 0 : index
    %c0_13 = arith.constant 0 : index
    %13 = vector.load %arg6[%c0_12, %c0_13] : memref<1x4xf32, #tpu.memory_space<vmem>>, vector<1x4xf32>
    %14 = vector.broadcast %13 : vector<1x4xf32> to vector<4x4xf32>
    %15 = arith.addf %12, %14 : vector<4x4xf32>
    %cst_14 = arith.constant 0.0333333351 : f32
    %16 = vector.broadcast %cst_14 : f32 to vector<4x4xf32>
    %17 = arith.mulf %15, %16 : vector<4x4xf32>
    %cst_15 = arith.constant dense<0xFF800000> : vector<4xf32>
    %18 = vector.multi_reduction <maximumf>, %17, %cst_15 [1] : vector<4x4xf32> to vector<4xf32>
    %19 = vector.shape_cast %18 : vector<4xf32> to vector<4x1xf32>
    %20 = vector.broadcast %19 : vector<4x1xf32> to vector<4x4xf32>
    %21 = arith.subf %17, %20 : vector<4x4xf32>
    %22 = math.exp %21 : vector<4x4xf32>
    %cst_16 = arith.constant dense<0.000000e+00> : vector<4xf32>
    %23 = vector.multi_reduction <add>, %22, %cst_16 [1] : vector<4x4xf32> to vector<4xf32>
    %24 = vector.shape_cast %23 : vector<4xf32> to vector<4x1xf32>
    %25 = vector.broadcast %24 : vector<4x1xf32> to vector<4x4xf32>
    %26 = arith.divf %22, %25 : vector<4x4xf32>
    %c0_17 = arith.constant 0 : index
    %c0_18 = arith.constant 0 : index
    %c0_19 = arith.constant 0 : index
    %27 = vector.load %arg2[%c0_17, %c0_18, %c0_19] : memref<4x8x384xf32, #tpu.memory_space<vmem>>, vector<4x8x256xf32>
    %c0_20 = arith.constant 0 : index
    %c0_21 = arith.constant 0 : index
    %c0_22 = arith.constant 0 : index
    %28 = vector.load %arg9[%c0_20, %c0_21, %c0_22] : memref<4x72x256xf32, #tpu.memory_space<vmem>>, vector<4x8x256xf32>
    tpu.vector_store %arg9[%c0_20, %c0_21, %c0_22], %27 {strides = array<i32>} : memref<4x72x256xf32, #tpu.memory_space<vmem>>, vector<4x8x256xf32>,
    %c0_23 = arith.constant 0 : index
    %c0_24 = arith.constant 0 : index
    %c1 = arith.constant 1 : index
    %29 = vector.load %arg2[%c0_23, %c0_24, %c1] : memref<4x8x384xf32, #tpu.memory_space<vmem>>, vector<4x8x256xf32>
    %c0_25 = arith.constant 0 : index
    %c8 = arith.constant 8 : index
    %c0_26 = arith.constant 0 : index
    %30 = vector.load %arg9[%c0_25, %c8, %c0_26] : memref<4x72x256xf32, #tpu.memory_space<vmem>>, vector<4x8x256xf32>
    tpu.vector_store %arg9[%c0_25, %c8, %c0_26], %29 {strides = array<i32>} : memref<4x72x256xf32, #tpu.memory_space<vmem>>, vector<4x8x256xf32>,
    %c0_27 = arith.constant 0 : index
    %c0_28 = arith.constant 0 : index
    %c2 = arith.constant 2 : index
    %31 = vector.load %arg2[%c0_27, %c0_28, %c2] : memref<4x8x384xf32, #tpu.memory_space<vmem>>, vector<4x8x256xf32>
    %c0_29 = arith.constant 0 : index
    %c16 = arith.constant 16 : index
    %c0_30 = arith.constant 0 : index
    %32 = vector.load %arg9[%c0_29, %c16, %c0_30] : memref<4x72x256xf32, #tpu.memory_space<vmem>>, vector<4x8x256xf32>
    tpu.vector_store %arg9[%c0_29, %c16, %c0_30], %31 {strides = array<i32>} : memref<4x72x256xf32, #tpu.memory_space<vmem>>, vector<4x8x256xf32>,
    %c0_31 = arith.constant 0 : index
    %c0_32 = arith.constant 0 : index
    %c16_33 = arith.constant 16 : index
    %33 = vector.load %arg2[%c0_31, %c0_32, %c16_33] : memref<4x8x384xf32, #tpu.memory_space<vmem>>, vector<4x8x256xf32>
    %c0_34 = arith.constant 0 : index
    %c24 = arith.constant 24 : index
    %c0_35 = arith.constant 0 : index
    %34 = vector.load %arg9[%c0_34, %c24, %c0_35] : memref<4x72x256xf32, #tpu.memory_space<vmem>>, vector<4x8x256xf32>
    tpu.vector_store %arg9[%c0_34, %c24, %c0_35], %33 {strides = array<i32>} : memref<4x72x256xf32, #tpu.memory_space<vmem>>, vector<4x8x256xf32>,
    %c0_36 = arith.constant 0 : index
    %c0_37 = arith.constant 0 : index
    %c17 = arith.constant 17 : index
    %35 = vector.load %arg2[%c0_36, %c0_37, %c17] : memref<4x8x384xf32, #tpu.memory_space<vmem>>, vector<4x8x256xf32>
    %c0_38 = arith.constant 0 : index
    %c32 = arith.constant 32 : index
    %c0_39 = arith.constant 0 : index
    %36 = vector.load %arg9[%c0_38, %c32, %c0_39] : memref<4x72x256xf32, #tpu.memory_space<vmem>>, vector<4x8x256xf32>
    tpu.vector_store %arg9[%c0_38, %c32, %c0_39], %35 {strides = array<i32>} : memref<4x72x256xf32, #tpu.memory_space<vmem>>, vector<4x8x256xf32>,
    %c0_40 = arith.constant 0 : index
    %c0_41 = arith.constant 0 : index
    %c18 = arith.constant 18 : index
    %37 = vector.load %arg2[%c0_40, %c0_41, %c18] : memref<4x8x384xf32, #tpu.memory_space<vmem>>, vector<4x8x256xf32>
    %c0_42 = arith.constant 0 : index
    %c40 = arith.constant 40 : index
    %c0_43 = arith.constant 0 : index
    %38 = vector.load %arg9[%c0_42, %c40, %c0_43] : memref<4x72x256xf32, #tpu.memory_space<vmem>>, vector<4x8x256xf32>
    tpu.vector_store %arg9[%c0_42, %c40, %c0_43], %37 {strides = array<i32>} : memref<4x72x256xf32, #tpu.memory_space<vmem>>, vector<4x8x256xf32>,
    %c0_44 = arith.constant 0 : index
    %c0_45 = arith.constant 0 : index
    %c32_46 = arith.constant 32 : index
    %39 = vector.load %arg2[%c0_44, %c0_45, %c32_46] : memref<4x8x384xf32, #tpu.memory_space<vmem>>, vector<4x8x256xf32>
    %c0_47 = arith.constant 0 : index
    %c48 = arith.constant 48 : index
    %c0_48 = arith.constant 0 : index
    %40 = vector.load %arg9[%c0_47, %c48, %c0_48] : memref<4x72x256xf32, #tpu.memory_space<vmem>>, vector<4x8x256xf32>
    tpu.vector_store %arg9[%c0_47, %c48, %c0_48], %39 {strides = array<i32>} : memref<4x72x256xf32, #tpu.memory_space<vmem>>, vector<4x8x256xf32>,
    %c0_49 = arith.constant 0 : index
    %c0_50 = arith.constant 0 : index
    %c33 = arith.constant 33 : index
    %41 = vector.load %arg2[%c0_49, %c0_50, %c33] : memref<4x8x384xf32, #tpu.memory_space<vmem>>, vector<4x8x256xf32>
    %c0_51 = arith.constant 0 : index
    %c56 = arith.constant 56 : index
    %c0_52 = arith.constant 0 : index
    %42 = vector.load %arg9[%c0_51, %c56, %c0_52] : memref<4x72x256xf32, #tpu.memory_space<vmem>>, vector<4x8x256xf32>
    tpu.vector_store %arg9[%c0_51, %c56, %c0_52], %41 {strides = array<i32>} : memref<4x72x256xf32, #tpu.memory_space<vmem>>, vector<4x8x256xf32>,
    %c0_53 = arith.constant 0 : index
    %c0_54 = arith.constant 0 : index
    %c34 = arith.constant 34 : index
    %43 = vector.load %arg2[%c0_53, %c0_54, %c34] : memref<4x8x384xf32, #tpu.memory_space<vmem>>, vector<4x8x256xf32>
    %c0_55 = arith.constant 0 : index
    %c64 = arith.constant 64 : index
    %c0_56 = arith.constant 0 : index
    %44 = vector.load %arg9[%c0_55, %c64, %c0_56] : memref<4x72x256xf32, #tpu.memory_space<vmem>>, vector<4x8x256xf32>
    tpu.vector_store %arg9[%c0_55, %c64, %c0_56], %43 {strides = array<i32>} : memref<4x72x256xf32, #tpu.memory_space<vmem>>, vector<4x8x256xf32>,
    %45 = vector.extract_strided_slice %26 {offsets = [0, 0], sizes = [1, 4], strides = [1, 1]} : vector<4x4xf32> to vector<1x4xf32>
    %46 = vector.extract_strided_slice %45 {offsets = [0, 0], sizes = [1, 1], strides = [1, 1]} : vector<1x4xf32> to vector<1x1xf32>
    %c0_57 = arith.constant 0 : index
    %c0_58 = arith.constant 0 : index
    %c0_59 = arith.constant 0 : index
    %47 = vector.load %arg7[%c0_57, %c0_58, %c0_59] : memref<4x8x72xf32, #tpu.memory_space<vmem>>, vector<1x8x72xf32>
    %48 = vector.shape_cast %47 : vector<1x8x72xf32> to vector<8x72xf32>
    %49 = vector.broadcast %46 : vector<1x1xf32> to vector<8x72xf32>
    %50 = arith.mulf %49, %48 : vector<8x72xf32>
    %51 = vector.extract_strided_slice %45 {offsets = [0, 1], sizes = [1, 1], strides = [1, 1]} : vector<1x4xf32> to vector<1x1xf32>
    %c1_60 = arith.constant 1 : index
    %c0_61 = arith.constant 0 : index
    %c0_62 = arith.constant 0 : index
    %52 = vector.load %arg7[%c1_60, %c0_61, %c0_62] : memref<4x8x72xf32, #tpu.memory_space<vmem>>, vector<1x8x72xf32>
    %53 = vector.shape_cast %52 : vector<1x8x72xf32> to vector<8x72xf32>
    %54 = vector.broadcast %51 : vector<1x1xf32> to vector<8x72xf32>
    %55 = arith.mulf %54, %53 : vector<8x72xf32>
    %56 = arith.addf %50, %55 : vector<8x72xf32>
    %57 = vector.extract_strided_slice %45 {offsets = [0, 2], sizes = [1, 1], strides = [1, 1]} : vector<1x4xf32> to vector<1x1xf32>
    %c2_63 = arith.constant 2 : index
    %c0_64 = arith.constant 0 : index
    %c0_65 = arith.constant 0 : index
    %58 = vector.load %arg7[%c2_63, %c0_64, %c0_65] : memref<4x8x72xf32, #tpu.memory_space<vmem>>, vector<1x8x72xf32>
    %59 = vector.shape_cast %58 : vector<1x8x72xf32> to vector<8x72xf32>
    %60 = vector.broadcast %57 : vector<1x1xf32> to vector<8x72xf32>
    %61 = arith.mulf %60, %59 : vector<8x72xf32>
    %62 = arith.addf %56, %61 : vector<8x72xf32>
    %63 = vector.extract_strided_slice %45 {offsets = [0, 3], sizes = [1, 1], strides = [1, 1]} : vector<1x4xf32> to vector<1x1xf32>
    %c3 = arith.constant 3 : index
    %c0_66 = arith.constant 0 : index
    %c0_67 = arith.constant 0 : index
    %64 = vector.load %arg7[%c3, %c0_66, %c0_67] : memref<4x8x72xf32, #tpu.memory_space<vmem>>, vector<1x8x72xf32>
    %65 = vector.shape_cast %64 : vector<1x8x72xf32> to vector<8x72xf32>
    %66 = vector.broadcast %63 : vector<1x1xf32> to vector<8x72xf32>
    %67 = arith.mulf %66, %65 : vector<8x72xf32>
    %68 = arith.addf %62, %67 : vector<8x72xf32>
    %c0_68 = arith.constant 0 : index
    %c0_69 = arith.constant 0 : index
    %c0_70 = arith.constant 0 : index
    %69 = vector.load %arg9[%c0_68, %c0_69, %c0_70] : memref<4x72x256xf32, #tpu.memory_space<vmem>>, vector<1x72x256xf32>
    %70 = vector.shape_cast %69 : vector<1x72x256xf32> to vector<72x256xf32>
    %cst_71 = arith.constant dense<0.000000e+00> : vector<8x256xf32>
    %71 = tpu.matmul %68, %70, %cst_71 {dimension_numbers = #tpu.dot_dimension_numbers<[1], [0], [0], [1], [0, 0, 1, 1], [], []>} : vector<8x72xf32>, vector<72x256xf32>, vector<8x256xf32> -> vector<8x256xf32>
    %c0_72 = arith.constant 0 : index
    %c0_73 = arith.constant 0 : index
    %c0_74 = arith.constant 0 : index
    %72 = vector.load %arg8[%c0_72, %c0_73, %c0_74] : memref<4x8x256xf32, #tpu.memory_space<vmem>>, vector<1x8x256xf32>
    %73 = vector.shape_cast %72 : vector<1x8x256xf32> to vector<8x256xf32>
    %74 = vector.shape_cast %71 : vector<8x256xf32> to vector<1x8x256xf32>
    tpu.vector_store %arg8[%c0_72, %c0_73, %c0_74], %74 {strides = array<i32>} : memref<4x8x256xf32, #tpu.memory_space<vmem>>, vector<1x8x256xf32>,
    %75 = vector.extract_strided_slice %26 {offsets = [1, 0], sizes = [1, 4], strides = [1, 1]} : vector<4x4xf32> to vector<1x4xf32>
    %76 = vector.extract_strided_slice %75 {offsets = [0, 0], sizes = [1, 1], strides = [1, 1]} : vector<1x4xf32> to vector<1x1xf32>
    %c0_75 = arith.constant 0 : index
    %c0_76 = arith.constant 0 : index
    %c0_77 = arith.constant 0 : index
    %77 = vector.load %arg7[%c0_75, %c0_76, %c0_77] : memref<4x8x72xf32, #tpu.memory_space<vmem>>, vector<1x8x72xf32>
    %78 = vector.shape_cast %77 : vector<1x8x72xf32> to vector<8x72xf32>
    %79 = vector.broadcast %76 : vector<1x1xf32> to vector<8x72xf32>
    %80 = arith.mulf %79, %78 : vector<8x72xf32>
    %81 = vector.extract_strided_slice %75 {offsets = [0, 1], sizes = [1, 1], strides = [1, 1]} : vector<1x4xf32> to vector<1x1xf32>
    %c1_78 = arith.constant 1 : index
    %c0_79 = arith.constant 0 : index
    %c0_80 = arith.constant 0 : index
    %82 = vector.load %arg7[%c1_78, %c0_79, %c0_80] : memref<4x8x72xf32, #tpu.memory_space<vmem>>, vector<1x8x72xf32>
    %83 = vector.shape_cast %82 : vector<1x8x72xf32> to vector<8x72xf32>
    %84 = vector.broadcast %81 : vector<1x1xf32> to vector<8x72xf32>
    %85 = arith.mulf %84, %83 : vector<8x72xf32>
    %86 = arith.addf %80, %85 : vector<8x72xf32>
    %87 = vector.extract_strided_slice %75 {offsets = [0, 2], sizes = [1, 1], strides = [1, 1]} : vector<1x4xf32> to vector<1x1xf32>
    %c2_81 = arith.constant 2 : index
    %c0_82 = arith.constant 0 : index
    %c0_83 = arith.constant 0 : index
    %88 = vector.load %arg7[%c2_81, %c0_82, %c0_83] : memref<4x8x72xf32, #tpu.memory_space<vmem>>, vector<1x8x72xf32>
    %89 = vector.shape_cast %88 : vector<1x8x72xf32> to vector<8x72xf32>
    %90 = vector.broadcast %87 : vector<1x1xf32> to vector<8x72xf32>
    %91 = arith.mulf %90, %89 : vector<8x72xf32>
    %92 = arith.addf %86, %91 : vector<8x72xf32>
    %93 = vector.extract_strided_slice %75 {offsets = [0, 3], sizes = [1, 1], strides = [1, 1]} : vector<1x4xf32> to vector<1x1xf32>
    %c3_84 = arith.constant 3 : index
    %c0_85 = arith.constant 0 : index
    %c0_86 = arith.constant 0 : index
    %94 = vector.load %arg7[%c3_84, %c0_85, %c0_86] : memref<4x8x72xf32, #tpu.memory_space<vmem>>, vector<1x8x72xf32>
    %95 = vector.shape_cast %94 : vector<1x8x72xf32> to vector<8x72xf32>
    %96 = vector.broadcast %93 : vector<1x1xf32> to vector<8x72xf32>
    %97 = arith.mulf %96, %95 : vector<8x72xf32>
    %98 = arith.addf %92, %97 : vector<8x72xf32>
    %c1_87 = arith.constant 1 : index
    %c0_88 = arith.constant 0 : index
    %c0_89 = arith.constant 0 : index
    %99 = vector.load %arg9[%c1_87, %c0_88, %c0_89] : memref<4x72x256xf32, #tpu.memory_space<vmem>>, vector<1x72x256xf32>
    %100 = vector.shape_cast %99 : vector<1x72x256xf32> to vector<72x256xf32>
    %cst_90 = arith.constant dense<0.000000e+00> : vector<8x256xf32>
    %101 = tpu.matmul %98, %100, %cst_90 {dimension_numbers = #tpu.dot_dimension_numbers<[1], [0], [0], [1], [0, 0, 1, 1], [], []>} : vector<8x72xf32>, vector<72x256xf32>, vector<8x256xf32> -> vector<8x256xf32>
    %c1_91 = arith.constant 1 : index
    %c0_92 = arith.constant 0 : index
    %c0_93 = arith.constant 0 : index
    %102 = vector.load %arg8[%c1_91, %c0_92, %c0_93] : memref<4x8x256xf32, #tpu.memory_space<vmem>>, vector<1x8x256xf32>
    %103 = vector.shape_cast %102 : vector<1x8x256xf32> to vector<8x256xf32>
    %104 = vector.shape_cast %101 : vector<8x256xf32> to vector<1x8x256xf32>
    tpu.vector_store %arg8[%c1_91, %c0_92, %c0_93], %104 {strides = array<i32>} : memref<4x8x256xf32, #tpu.memory_space<vmem>>, vector<1x8x256xf32>,
    %105 = vector.extract_strided_slice %26 {offsets = [2, 0], sizes = [1, 4], strides = [1, 1]} : vector<4x4xf32> to vector<1x4xf32>
    %106 = vector.extract_strided_slice %105 {offsets = [0, 0], sizes = [1, 1], strides = [1, 1]} : vector<1x4xf32> to vector<1x1xf32>
    %c0_94 = arith.constant 0 : index
    %c0_95 = arith.constant 0 : index
    %c0_96 = arith.constant 0 : index
    %107 = vector.load %arg7[%c0_94, %c0_95, %c0_96] : memref<4x8x72xf32, #tpu.memory_space<vmem>>, vector<1x8x72xf32>
    %108 = vector.shape_cast %107 : vector<1x8x72xf32> to vector<8x72xf32>
    %109 = vector.broadcast %106 : vector<1x1xf32> to vector<8x72xf32>
    %110 = arith.mulf %109, %108 : vector<8x72xf32>
    %111 = vector.extract_strided_slice %105 {offsets = [0, 1], sizes = [1, 1], strides = [1, 1]} : vector<1x4xf32> to vector<1x1xf32>
    %c1_97 = arith.constant 1 : index
    %c0_98 = arith.constant 0 : index
    %c0_99 = arith.constant 0 : index
    %112 = vector.load %arg7[%c1_97, %c0_98, %c0_99] : memref<4x8x72xf32, #tpu.memory_space<vmem>>, vector<1x8x72xf32>
    %113 = vector.shape_cast %112 : vector<1x8x72xf32> to vector<8x72xf32>
    %114 = vector.broadcast %111 : vector<1x1xf32> to vector<8x72xf32>
    %115 = arith.mulf %114, %113 : vector<8x72xf32>
    %116 = arith.addf %110, %115 : vector<8x72xf32>
    %117 = vector.extract_strided_slice %105 {offsets = [0, 2], sizes = [1, 1], strides = [1, 1]} : vector<1x4xf32> to vector<1x1xf32>
    %c2_100 = arith.constant 2 : index
    %c0_101 = arith.constant 0 : index
    %c0_102 = arith.constant 0 : index
    %118 = vector.load %arg7[%c2_100, %c0_101, %c0_102] : memref<4x8x72xf32, #tpu.memory_space<vmem>>, vector<1x8x72xf32>
    %119 = vector.shape_cast %118 : vector<1x8x72xf32> to vector<8x72xf32>
    %120 = vector.broadcast %117 : vector<1x1xf32> to vector<8x72xf32>
    %121 = arith.mulf %120, %119 : vector<8x72xf32>
    %122 = arith.addf %116, %121 : vector<8x72xf32>
    %123 = vector.extract_strided_slice %105 {offsets = [0, 3], sizes = [1, 1], strides = [1, 1]} : vector<1x4xf32> to vector<1x1xf32>
    %c3_103 = arith.constant 3 : index
    %c0_104 = arith.constant 0 : index
    %c0_105 = arith.constant 0 : index
    %124 = vector.load %arg7[%c3_103, %c0_104, %c0_105] : memref<4x8x72xf32, #tpu.memory_space<vmem>>, vector<1x8x72xf32>
    %125 = vector.shape_cast %124 : vector<1x8x72xf32> to vector<8x72xf32>
    %126 = vector.broadcast %123 : vector<1x1xf32> to vector<8x72xf32>
    %127 = arith.mulf %126, %125 : vector<8x72xf32>
    %128 = arith.addf %122, %127 : vector<8x72xf32>
    %c2_106 = arith.constant 2 : index
    %c0_107 = arith.constant 0 : index
    %c0_108 = arith.constant 0 : index
    %129 = vector.load %arg9[%c2_106, %c0_107, %c0_108] : memref<4x72x256xf32, #tpu.memory_space<vmem>>, vector<1x72x256xf32>
    %130 = vector.shape_cast %129 : vector<1x72x256xf32> to vector<72x256xf32>
    %cst_109 = arith.constant dense<0.000000e+00> : vector<8x256xf32>
    %131 = tpu.matmul %128, %130, %cst_109 {dimension_numbers = #tpu.dot_dimension_numbers<[1], [0], [0], [1], [0, 0, 1, 1], [], []>} : vector<8x72xf32>, vector<72x256xf32>, vector<8x256xf32> -> vector<8x256xf32>
    %c2_110 = arith.constant 2 : index
    %c0_111 = arith.constant 0 : index
    %c0_112 = arith.constant 0 : index
    %132 = vector.load %arg8[%c2_110, %c0_111, %c0_112] : memref<4x8x256xf32, #tpu.memory_space<vmem>>, vector<1x8x256xf32>
    %133 = vector.shape_cast %132 : vector<1x8x256xf32> to vector<8x256xf32>
    %134 = vector.shape_cast %131 : vector<8x256xf32> to vector<1x8x256xf32>
    tpu.vector_store %arg8[%c2_110, %c0_111, %c0_112], %134 {strides = array<i32>} : memref<4x8x256xf32, #tpu.memory_space<vmem>>, vector<1x8x256xf32>,
    %135 = vector.extract_strided_slice %26 {offsets = [3, 0], sizes = [1, 4], strides = [1, 1]} : vector<4x4xf32> to vector<1x4xf32>
    %136 = vector.extract_strided_slice %135 {offsets = [0, 0], sizes = [1, 1], strides = [1, 1]} : vector<1x4xf32> to vector<1x1xf32>
    %c0_113 = arith.constant 0 : index
    %c0_114 = arith.constant 0 : index
    %c0_115 = arith.constant 0 : index
    %137 = vector.load %arg7[%c0_113, %c0_114, %c0_115] : memref<4x8x72xf32, #tpu.memory_space<vmem>>, vector<1x8x72xf32>
    %138 = vector.shape_cast %137 : vector<1x8x72xf32> to vector<8x72xf32>
    %139 = vector.broadcast %136 : vector<1x1xf32> to vector<8x72xf32>
    %140 = arith.mulf %139, %138 : vector<8x72xf32>
    %141 = vector.extract_strided_slice %135 {offsets = [0, 1], sizes = [1, 1], strides = [1, 1]} : vector<1x4xf32> to vector<1x1xf32>
    %c1_116 = arith.constant 1 : index
    %c0_117 = arith.constant 0 : index
    %c0_118 = arith.constant 0 : index
    %142 = vector.load %arg7[%c1_116, %c0_117, %c0_118] : memref<4x8x72xf32, #tpu.memory_space<vmem>>, vector<1x8x72xf32>
    %143 = vector.shape_cast %142 : vector<1x8x72xf32> to vector<8x72xf32>
    %144 = vector.broadcast %141 : vector<1x1xf32> to vector<8x72xf32>
    %145 = arith.mulf %144, %143 : vector<8x72xf32>
    %146 = arith.addf %140, %145 : vector<8x72xf32>
    %147 = vector.extract_strided_slice %135 {offsets = [0, 2], sizes = [1, 1], strides = [1, 1]} : vector<1x4xf32> to vector<1x1xf32>
    %c2_119 = arith.constant 2 : index
    %c0_120 = arith.constant 0 : index
    %c0_121 = arith.constant 0 : index
    %148 = vector.load %arg7[%c2_119, %c0_120, %c0_121] : memref<4x8x72xf32, #tpu.memory_space<vmem>>, vector<1x8x72xf32>
    %149 = vector.shape_cast %148 : vector<1x8x72xf32> to vector<8x72xf32>
    %150 = vector.broadcast %147 : vector<1x1xf32> to vector<8x72xf32>
    %151 = arith.mulf %150, %149 : vector<8x72xf32>
    %152 = arith.addf %146, %151 : vector<8x72xf32>
    %153 = vector.extract_strided_slice %135 {offsets = [0, 3], sizes = [1, 1], strides = [1, 1]} : vector<1x4xf32> to vector<1x1xf32>
    %c3_122 = arith.constant 3 : index
    %c0_123 = arith.constant 0 : index
    %c0_124 = arith.constant 0 : index
    %154 = vector.load %arg7[%c3_122, %c0_123, %c0_124] : memref<4x8x72xf32, #tpu.memory_space<vmem>>, vector<1x8x72xf32>
    %155 = vector.shape_cast %154 : vector<1x8x72xf32> to vector<8x72xf32>
    %156 = vector.broadcast %153 : vector<1x1xf32> to vector<8x72xf32>
    %157 = arith.mulf %156, %155 : vector<8x72xf32>
    %158 = arith.addf %152, %157 : vector<8x72xf32>
    %c3_125 = arith.constant 3 : index
    %c0_126 = arith.constant 0 : index
    %c0_127 = arith.constant 0 : index
    %159 = vector.load %arg9[%c3_125, %c0_126, %c0_127] : memref<4x72x256xf32, #tpu.memory_space<vmem>>, vector<1x72x256xf32>
    %160 = vector.shape_cast %159 : vector<1x72x256xf32> to vector<72x256xf32>
    %cst_128 = arith.constant dense<0.000000e+00> : vector<8x256xf32>
    %161 = tpu.matmul %158, %160, %cst_128 {dimension_numbers = #tpu.dot_dimension_numbers<[1], [0], [0], [1], [0, 0, 1, 1], [], []>} : vector<8x72xf32>, vector<72x256xf32>, vector<8x256xf32> -> vector<8x256xf32>
    %c3_129 = arith.constant 3 : index
    %c0_130 = arith.constant 0 : index
    %c0_131 = arith.constant 0 : index
    %162 = vector.load %arg8[%c3_129, %c0_130, %c0_131] : memref<4x8x256xf32, #tpu.memory_space<vmem>>, vector<1x8x256xf32>
    %163 = vector.shape_cast %162 : vector<1x8x256xf32> to vector<8x256xf32>
    %164 = vector.shape_cast %161 : vector<8x256xf32> to vector<1x8x256xf32>
    tpu.vector_store %arg8[%c3_129, %c0_130, %c0_131], %164 {strides = array<i32>} : memref<4x8x256xf32, #tpu.memory_space<vmem>>, vector<1x8x256xf32>,
    return
  }
  func.func @transform_0(%arg0: i32) -> (i32, i32, i32) {
    %c0_i32 = arith.constant 0 : i32
    %c0_i32_0 = arith.constant 0 : i32
    %c0_i32_1 = arith.constant 0 : i32
    return %arg0, %c0_i32, %c0_i32_0 : i32, i32, i32
  }
  func.func @transform_1(%arg0: i32) -> (i32, i32, i32) {
    %c0_i32 = arith.constant 0 : i32
    %c0_i32_0 = arith.constant 0 : i32
    %c0_i32_1 = arith.constant 0 : i32
    return %arg0, %c0_i32, %c0_i32_0 : i32, i32, i32
  }
  func.func @transform_2(%arg0: i32) -> (i32, i32) {
    %c0_i32 = arith.constant 0 : i32
    %c0_i32_0 = arith.constant 0 : i32
    %c0_i32_1 = arith.constant 0 : i32
    return %c0_i32, %c0_i32_0 : i32, i32
  }
  func.func @transform_3(%arg0: i32) -> (i32, i32) {
    %c0_i32 = arith.constant 0 : i32
    %c0_i32_0 = arith.constant 0 : i32
    %c0_i32_1 = arith.constant 0 : i32
    return %c0_i32, %c0_i32_0 : i32, i32
  }
  func.func @transform_4(%arg0: i32) -> (i32, i32) {
    %c0_i32 = arith.constant 0 : i32
    %c0_i32_0 = arith.constant 0 : i32
    %c0_i32_1 = arith.constant 0 : i32
    return %c0_i32, %c0_i32_0 : i32, i32
  }
  func.func @transform_5(%arg0: i32) -> (i32, i32) {
    %c0_i32 = arith.constant 0 : i32
    %c0_i32_0 = arith.constant 0 : i32
    %c0_i32_1 = arith.constant 0 : i32
    return %c0_i32, %c0_i32_0 : i32, i32
  }
  func.func @transform_6(%arg0: i32) -> (i32, i32, i32) {
    %c0_i32 = arith.constant 0 : i32
    %c0_i32_0 = arith.constant 0 : i32
    %c0_i32_1 = arith.constant 0 : i32
    %c0_i32_2 = arith.constant 0 : i32
    return %c0_i32, %c0_i32_0, %c0_i32_1 : i32, i32, i32
  }
  func.func @transform_7(%arg0: i32) -> (i32, i32, i32) {
    %c0_i32 = arith.constant 0 : i32
    %c0_i32_0 = arith.constant 0 : i32
    %c0_i32_1 = arith.constant 0 : i32
    return %arg0, %c0_i32, %c0_i32_0 : i32, i32, i32
  }
}

</mosaic_0001>

<bundles_post_ra>
// kernel: conv_dy2d_forward.1
= control target key start
LH: loop header
LB: loop body
LE: loop exit
PB: predicated region body
PF: predicated region fallthrough
CT: control target
= control target key end

     0   :  { %s2169_s24 = smov 0   ;;  %s2603_s0 = inlined_call_operand.vmem [shape: f32[8,8,256], index: 0, kind: input, shape index: {}]   ;;  %s2604_s1 = inlined_call_operand.vmem [shape: f32[8,8,384], index: 1, kind: input, shape index: {}]   ;;  %s2605_s2 = inlined_call_operand.vmem [shape: f32[8,2], index: 2, kind: input, shape index: {}]   ;;  %s2606_s3 = inlined_call_operand.vmem [shape: f32[1,2], index: 3, kind: input, shape index: {}]   ;;  %s2607_s4 = inlined_call_operand.vmem [shape: f32[2,4], index: 4, kind: input, shape index: {}]   ;;  %s2608_s5 = inlined_call_operand.vmem [shape: f32[1,4], index: 5, kind: input, shape index: {}]   ;;  %s2609_s6 = inlined_call_operand.vmem [shape: f32[4,8,72], index: 6, kind: input, shape index: {}]   ;;  %s2610_s7 = inlined_call_operand.vmem [shape: f32[8,8,256], index: 7, kind: output, shape index: {}]  }
   0x1 LB: > { %s1722_s25 = sadd.s32 4294967295, %s2116_s24   ;;  %p1726_p0 = scmp.ge.s32.totalorder %s2116_s24, 1  ;;  %s2116_s24 = sphi %s2169_s24, %s17_s24  }
   0x2   : > { %p251_p1 = scmp.lt.s32.totalorder %s2116_s24, 3 }
   0x4   : > { %p252_p2 = pnand %p1726_p0, %p251_p1 }
   0x5   : > { %s1727_s26 = sshll.u32 (!%p252_p2), %s1722_s25, 2  ;;  %v337_v12 = vld [vmem:[%s2605_s2] sm:$0xff] (!%p252_p2)  ;;  %v2118_v13 = vmov (!%p252_p2), 0.0   ;;  %vm2119_vm0 = vmmov (!%p252_p2), 0   ;;  %v349_v14 = vlaneseq (!%p252_p2)  ;;  %vm367_vm1 = vcmask (!%p252_p2), 1041409   ;;  %s2120_s18 = smov (!%p252_p2), 127  }
   0x6   : > { %255 = sbr.rel (%p252_p2) target bundleno = 1333 (0x535), region = 48  ;;  %p292_p3 = scmp.lt.s32.totalorder (!%p252_p2), %s1727_s26, 7  ;;  %1770 = vmatprep.subr.mxu0 (!%p252_p2), %v2118_v13  ;;  %1772 = vmatprep.mubr.msk.f32.mxu0 (!%p252_p2), %vm2119_vm0, %v2118_v13  ;;  %vm369_vm2 = vcmask (!%p252_p2), 1042434   ;;  %vm371_vm3 = vcmask (!%p252_p2), 1043459   ;;  %vm373_vm4 = vcmask (!%p252_p2), 64512   ;;  %vm459_vm5 = vcmask (!%p252_p2), 1041408  }
   0x7   : > { %1771 = vmatpush3.msra.mxu0 (!%p252_p2), %v337_v12  ;;  %1775 = vmatprep.subr.mxu1 (!%p252_p2), %v2118_v13  ;;  %v350_v15 = vand.u32 (!%p252_p2), 127, %v349_v14  ;;  %v352_v16 = vshrl.u32 (!%p252_p2), %v349_v14, 7  ;;  %v447_v33 = vld [vmem:[%s2607_s4] sm:$0x3] (!%p252_p2)  ;;  %vm455_vm6 = vcmask (!%p252_p2), 15360   ;;  %vm534_vm7 = vcmask (!%p252_p2), 27648  }
   0x8   : > { %1777 = vmatprep.mubr.msk.f32.mxu1 (!%p252_p2), %vm2119_vm0, %v2118_v13  ;;  %1776 = vmatpush3.msk.msra.mxu1 (!%p252_p2), %vm459_vm5, %v447_v33  ;;  %v1735_v34 = vld [vmem:[%s2606_s3] ss:$0 sm:$0xff] (!%p252_p2)  ;;  %s2121_s21 = smov (!%p252_p2), 112   ;;  %s2122_s22 = smov (!%p252_p2), 126   ;;  %vm610_vm8 = vcmask (!%p252_p2), 1039360   ;;  %vm756_vm9 = vcmask (!%p252_p2), 916480  }
   0x9   : > { %v353_v19 = vsub.s32 (!%p252_p2), %v350_v15, %v352_v16  ;;  %v1737_v42 = vld [vmem:[%s2608_s5] ss:$0 sm:$0xff] (!%p252_p2)  ;;  %s2123_s23 = smov (!%p252_p2), 110   ;;  %s2124_s25 = smov (!%p252_p2), 111   ;;  %vm683_vm10 = vcmask (!%p252_p2), 1031168   ;;  %vm902_vm11 = vcmask (!%p252_p2), 900096  }
   0xa   : > { %s2125_s28 = smov (!%p252_p2), 95   ;;  %s2126_s29 = smov (!%p252_p2), 96   ;;  %vm829_vm12 = vcmask (!%p252_p2), 908288   ;;  %vm1048_vm13 = vcmask (!%p252_p2), 777216   ;;  %vm975_vm14 = vcmask (!%p252_p2), 785408   ;;  %vm1121_vm15 = vcmask (!%p252_p2), 769024  }
   0xb   : > { %s2128_s8 = smov (!%p252_p2), 125   ;;  %vm1197_vm0 = vcmask (!%p252_p2), 588800  }
   0xd   : > { %s2612_s26 = smov (!%p292_p3, %s1727_s26), 7 }
   0xe   : > { %s1764_s27 = sshll.u32 %s2612_s26, 4  ;;  %s1844_s14 = smul.u32 24, %s2612_s26 }
   0xf   : > { %s296_s30 = scalar_lea.vmem %s2603_s0, %s1764_s27  ;;  %s310_s15 = scalar_lea.vmem %s2610_s7, %s1764_s27 }
  0x10   : > { %v312_v0 = vld [vmem:[%s296_s30] sm:$0xff]  ;;  %v313_v1 = vld [vmem:[%s296_s30 + $0x8] sm:$0xff]  ;;  %v314_v5 = vld [vmem:[%s296_s30 + $0x10] sm:$0xff]  ;;  %s2204_s17 = scalar_lea.vmem %s2604_s1, %s1844_s14 }
  0x11   : > { %v316_v2 = vld [vmem:[%s296_s30 + $0x20] sm:$0xff]  ;;  %v320_v3 = vadd.f32 %v313_v1, %v312_v0  ;;  %v317_v4 = vld [vmem:[%s296_s30 + $0x28] sm:$0xff]  ;;  %v315_v6 = vld [vmem:[%s296_s30 + $0x18] sm:$0xff] }
  0x12   : > { %v326_v7 = vadd.f32 %v317_v4, %v316_v2  ;;  %v318_v8 = vld [vmem:[%s296_s30 + $0x30] sm:$0xff]  ;;  %v319_v9 = vld [vmem:[%s296_s30 + $0x38] sm:$0xff]  ;;  %v323_v10 = vadd.f32 %v315_v6, %v314_v5  ;;  %v2207_v39 = vld [vmem:[%s2204_s17] sm:$0xff]  ;;  %s2127_s30 = smov 94  }
  0x13   : > { %321 = vadd.xlane.f32.xlu0 %v320_v3  ;;  %v329_v11 = vadd.f32 %v319_v9, %v318_v8  ;;  %v2210_v40 = vld [vmem:[%s2204_s17 + $0x20] sm:$0xff]  ;;  %v563_v48 = vld [vmem:[%s2204_s17 + $0x8] sm:$0xff]  ;;  %v2224_v49 = vld [vmem:[%s2204_s17 + $0x10] sm:$0xff] }
  0x14   : > { %327 = vadd.xlane.f32.xlu1 %v326_v7  ;;  %v2214_v41 = vpack.i.bf16 %v2210_v40, %v2207_v39  ;;  %v1896_v50 = vpack.i.bf16 %v2224_v49, %v563_v48  ;;  %v2228_v51 = vld [vmem:[%s2204_s17 + $0x18] sm:$0xff]  ;;  %v2231_v52 = vld [vmem:[%s2204_s17 + $0x28] sm:$0xff]  ;;  %v2272_v14 = vld [vmem:[%s2204_s17 + $0x40] sm:$0xff] }
  0x15   : > { %v1906_v53 = vpack.i.bf16 %v2228_v51, %v2231_v52  ;;  %v2269_v12 = vld [vmem:[%s2204_s17 + $0x38] sm:$0xff] }
  0x16   : > { %v2278_v15 = vpack.i.bf16 %v2272_v14, %v2269_v12 }
  0x17   : > { %324 = vadd.xlane.f32.xlu0 %v323_v10 }
  0x18   : > { %330 = vadd.xlane.f32.xlu1 %v329_v11 }
  0x29   : > { %1902 = vrot.lane.b32.xlu1 %v2214_v41, %s2120_s18 }
  0xa0   : > { %v322_v17 = vpop.xlane.xlu0 %321 }
  0xa1   : > { %v328_v18 = vpop.xlane.xlu1 %327  ;;  %v333_v20 = vmul.f32 0.00390625, %v322_v17 }
  0xa2   : > { %v335_v21 = vmul.f32 0.00390625, %v328_v18 }
  0xa3   : > { %v354_v26 = vrot.slane %v333_v20, %v353_v19 }
  0xa4   : > { %v325_v22 = vpop.xlane.xlu0 %324  ;;  %v362_v28 = vrot.slane %v335_v21, %v353_v19 }
  0xa5   : > { %v334_v23 = vmul.f32 0.00390625, %v325_v22  ;;  %v331_v24 = vpop.xlane.xlu1 %330 }
  0xa6   : > { %v336_v25 = vmul.f32 0.00390625, %v331_v24 }
  0xa7   : > { %v358_v27 = vrot.slane %v334_v23, %v353_v19 }
  0xa8   : > { %v366_v29 = vrot.slane %v336_v25, %v353_v19 }
  0xa9   : > { %v368_v30 = vsel %vm367_vm1, %v358_v27, %v354_v26  ;;  %v1903_v55 = vpop.permute.xlu1 %1902 }
  0xaa   : > { %v370_v31 = vsel %vm369_vm2, %v362_v28, %v368_v30  ;;  %v1904_v58 = vunpack.i.l.bf16 %v1903_v55  ;;  %v1905_v62 = vunpack.i.h.bf16 %v1903_v55 }
  0xab   : > { %v372_v32 = vsel %vm371_vm3, %v366_v29, %v370_v31 }
  0xac   : > { %1773 = vmatmul.mubr.msk.f32.vlgmr.msra.gmra.mrb[0].mxu0 %vm373_vm4, %v372_v32 }
  0xad   : > { %1265 = vmatprep.mubr.f32.mxu0 %v2118_v13 }
 0x17f   : > { %v442_v35 = vpop.f32.mrb[0].mxu0 }
 0x180   : > { %v443_v36 = vadd.f32 %v1735_v34, %v442_v35  ;;  %v1774_v37 = vpop.f32.mrb[1].mxu0 }
 0x182   : > { %v446_v38 = vmax.f32 %v443_v36, 0.0 }
 0x184   : > { %1778 = vmatmul.mubr.msk.f32.vlgmr.msra.gmra.mrb[0].mxu1 %vm455_vm6, %v446_v38 }
 0x185   : > { %1390 = vmatprep.mubr.f32.mxu1 %v2118_v13 }
 0x257   : > { %v529_v43 = vpop.f32.mrb[0].mxu1 }
 0x258   : > { %v530_v44 = vadd.f32 %v1737_v42, %v529_v43  ;;  %v1779_v45 = vpop.f32.mrb[1].mxu1 }
 0x25a   : > { %v533_v46 = vmul.f32 0.033333335, %v530_v44 }
 0x25c   : > { %v535_v47 = vsel %vm534_vm7, %v533_v46, -inf }
 0x25d   : > { %536 = vmax.xlane.f32.xlu0 %v535_v47 }
 0x273   : > { %1897 = vrot.lane.b32.xlu0 %v1896_v50, %s2120_s18 }
 0x277   : > { %1907 = vrot.lane.b32.xlu0 %v1906_v53, %s2120_s18 }
 0x27b   : > { %1917 = vrot.lane.b32.xlu0 %v1896_v50, %s2121_s21 }
 0x27f   : > { %1927 = vrot.lane.b32.xlu0 %v1906_v53, %s2122_s22 }
 0x283   : > { %1937 = vrot.lane.b32.xlu0 %v1906_v53, %s2121_s21 }
 0x287   : > { %1947 = vrot.lane.b32.xlu0 %v1896_v50, %s2123_s23 }
 0x28b   : > { %1957 = vrot.lane.b32.xlu0 %v1906_v53, %s2124_s25 }
 0x28f   : > { %1967 = vrot.lane.b32.xlu0 %v1906_v53, %s2123_s23 }
 0x293   : > { %1977 = vrot.lane.b32.xlu0 %v1896_v50, %s2125_s28 }
 0x297   : > { %1987 = vrot.lane.b32.xlu0 %v1906_v53, %s2126_s29 }
 0x29b   : > { %1997 = vrot.lane.b32.xlu0 %v1906_v53, %s2125_s28  ;;  %v2306_v53 = vld [vmem:[%s2204_s17 + $0x50] sm:$0xff] }
 0x29f   : > { %1099 = vrot.lane.b32.xlu0 %v563_v48, %s2127_s30 }
 0x2ea   : > { %v537_v54 = vpop.xlane.xlu0 %536 }
 0x2eb   : > { %v538_v56 = vsub.f32 %v533_v46, %v537_v54 }
 0x2ed   : > { %v539_v57 = vmul.f32 1.442695, %v538_v56 }
 0x2ee   : > { %v1898_v59 = vpop.permute.xlu0 %1897 }
 0x2ef   : > { %2106 = vpow2.f32 %v539_v57  ;;  %v1900_v60 = vunpack.i.h.bf16 %v1898_v59  ;;  %v1899_v61 = vunpack.i.l.bf16 %v1898_v59 }
 0x2f1   : > { %v611_v63 = vsel %vm610_vm8, %v1904_v58, %v1899_v61  ;;  %v612_v0 = vsel %vm610_vm8, %v1899_v61, %v1900_v60 }
 0x2f2   : > { %v1782_v1 = vpack.c.bf16 %v611_v63, %v2207_v39  ;;  %v1908_v2 = vpop.permute.xlu0 %1907  ;;  %v1780_v3 = vpack.c.bf16 %v612_v0, %v563_v48 }
 0x2f3   : > { %v1910_v4 = vunpack.i.h.bf16 %v1908_v2  ;;  %v1909_v5 = vunpack.i.l.bf16 %v1908_v2 }
 0x2f4   : > { %1781 = vmatprep.subr.bf16.mxu0 %v1780_v3 }
 0x2f5   : > { %v613_v6 = vsel %vm610_vm8, %v1910_v4, %v1905_v62  ;;  %v614_v7 = vsel %vm610_vm8, %v1905_v62, %v1909_v5  ;;  %1783 = vmatpush1.bf16.msra.mxu0 %v1782_v1 }
 0x2f6   : > { %v1798_v8 = vpack.c.bf16 %v613_v6, %v2228_v51  ;;  %v1796_v9 = vpack.c.bf16 %v614_v7, %v2210_v40  ;;  %v1918_v16 = vpop.permute.xlu0 %1917 }
 0x2f7   : > { %v1920_v20 = vunpack.i.h.bf16 %v1918_v16  ;;  %v1919_v21 = vunpack.i.l.bf16 %v1918_v16 }
 0x2f8   : > { %1797 = vmatprep.subr.bf16.mxu1 %v1796_v9 }
 0x2f9   : > { %v2107_v10 = vpop.eup %2106  ;;  %1799 = vmatpush1.bf16.msra.mxu1 %v1798_v8  ;;  %v758_v26 = vsel %vm756_vm9, %v1919_v21, %v1920_v20 }
 0x2fa   : > { %v541_v11 = vsel %vm534_vm7, %v2107_v10, 0.0  ;;  %v1928_v17 = vpop.permute.xlu0 %1927 }
 0x2fb   : > { %542 = vadd.xlane.f32.xlu1 %v541_v11  ;;  %v1930_v33 = vunpack.i.h.bf16 %v1928_v17  ;;  %v1929_v34 = vunpack.i.l.bf16 %v1928_v17  ;;  %v2336_v11 = vld [vmem:[%s2204_s17 + $0x58] sm:$0xff] }
 0x2fe   : > { %v1938_v18 = vpop.permute.xlu0 %1937 }
 0x2ff   : > { %v1940_v36 = vunpack.i.h.bf16 %v1938_v18  ;;  %v1939_v37 = vunpack.i.l.bf16 %v1938_v18 }
 0x302   : > { %v2284_v22 = vpop.permute.xlu0 %1947 }
 0x303   : > { %v1950_v43 = vunpack.i.h.bf16 %v2284_v22  ;;  %v1949_v44 = vunpack.i.l.bf16 %v2284_v22 }
 0x305   : > { %v904_v0 = vsel %vm902_vm11, %v1949_v44, %v1950_v43 }
 0x306   : > { %v2288_v30 = vpop.permute.xlu0 %1957 }
 0x307   : > { %v1960_v8 = vunpack.i.h.bf16 %v2288_v30  ;;  %v1959_v9 = vunpack.i.l.bf16 %v2288_v30 }
 0x30c   : > { %1912 = vrot.lane.b32.xlu1 %v1896_v50, %s2122_s22 }
 0x310   : > { %1922 = vrot.lane.b32.xlu1 %v2214_v41, %s2122_s22 }
 0x314   : > { %1932 = vrot.lane.b32.xlu1 %v2214_v41, %s2121_s21 }
 0x318   : > { %1942 = vrot.lane.b32.xlu1 %v1896_v50, %s2124_s25 }
 0x31c   : > { %1952 = vrot.lane.b32.xlu1 %v2214_v41, %s2124_s25 }
 0x320   : > { %1962 = vrot.lane.b32.xlu1 %v2214_v41, %s2123_s23 }
 0x324   : > { %1972 = vrot.lane.b32.xlu1 %v1896_v50, %s2126_s29  ;;  %v2303_v50 = vld [vmem:[%s2204_s17 + $0x30] sm:$0xff] }
 0x325   : > { %v2321_v1 = vpack.i.bf16 %v2306_v53, %v2303_v50 }
 0x328   : > { %1982 = vrot.lane.b32.xlu1 %v2214_v41, %s2126_s29 }
 0x32c   : > { %1992 = vrot.lane.b32.xlu1 %v2214_v41, %s2125_s28 }
 0x330   : > { %2002 = vrot.lane.b32.xlu1 %v2278_v15, %s2120_s18 }
 0x334   : > { %1101 = vrot.lane.b32.xlu1 %v2224_v49, %s2127_s30  ;;  %v1968_v49 = vpop.permute.xlu0 %1967 }
 0x335   : > { %v1970_v16 = vunpack.i.h.bf16 %v1968_v49  ;;  %v1969_v17 = vunpack.i.l.bf16 %v1968_v49 }
 0x338   : > { %v2324_v5 = vpop.permute.xlu0 %1977 }
 0x339   : > { %v1979_v22 = vunpack.i.l.bf16 %v2324_v5 }
 0x388   : > { %v543_v19 = vpop.xlane.xlu1 %542 }
 0x389   : > { %2108 = vrcp.f32 %v543_v19 }
 0x38c   : > { %v1913_v23 = vpop.permute.xlu1 %1912 }
 0x38d   : > { %v1915_v24 = vunpack.i.h.bf16 %v1913_v23  ;;  %v1914_v25 = vunpack.i.l.bf16 %v1913_v23 }
 0x38f   : > { %v685_v27 = vsel %vm683_vm10, %v1914_v25, %v1915_v24 }
 0x390   : > { %v1923_v28 = vpop.permute.xlu1 %1922  ;;  %v1784_v29 = vpack.c.bf16 %v758_v26, %v685_v27 }
 0x391   : > { %v1925_v31 = vunpack.i.h.bf16 %v1923_v28  ;;  %v1924_v32 = vunpack.i.l.bf16 %v1923_v28  ;;  %v1988_v28 = vpop.permute.xlu0 %1987 }
 0x392   : > { %1785 = vmatprep.subr.bf16.mxu0 %v1784_v29  ;;  %v1990_v49 = vunpack.i.h.bf16 %v1988_v28 }
 0x393   : > { %v2109_v35 = vpop.eup %2108  ;;  %v684_v41 = vsel %vm683_vm10, %v1924_v32, %v1914_v25  ;;  %v686_v45 = vsel %vm683_vm10, %v1930_v33, %v1925_v31  ;;  %v687_v48 = vsel %vm683_vm10, %v1925_v31, %v1929_v34 }
 0x394   : > { %v2290_v38 = vmul.f32 %v2109_v35, %v2107_v10  ;;  %v1933_v42 = vpop.permute.xlu1 %1932  ;;  %v2333_v10 = vld [vmem:[%s2204_s17 + $0x48] sm:$0xff] }
 0x395   : > { %v1935_v46 = vunpack.i.h.bf16 %v1933_v42  ;;  %v1934_v47 = vunpack.i.l.bf16 %v1933_v42  ;;  %v2352_v27 = vpack.i.bf16 %v2333_v10, %v2336_v11 }
 0x396   : > { %1163 = vrot.lane.b32.xlu1 %v2290_v38, %s2122_s22  ;;  %1154 = vrot.lane.b32.xlu0 %v2290_v38, %s2120_s18  ;;  %1845 = vpush %v2290_v38  ;;  %v2312_v57 = vrot.slane %v2290_v38, 1  ;;  %v2339_v18 = vrot.slane %v2290_v38, 2  ;;  %v2364_v43 = vrot.slane %v2290_v38, 3 }
 0x397   : > { %v757_v54 = vsel %vm756_vm9, %v1934_v47, %v1919_v21  ;;  %v759_v55 = vsel %vm756_vm9, %v1940_v36, %v1935_v46  ;;  %v760_v56 = vsel %vm756_vm9, %v1935_v46, %v1939_v37  ;;  %v1980_v21 = vunpack.i.h.bf16 %v2324_v5 }
 0x398   : > { %v1786_v58 = vpack.c.bf16 %v757_v54, %v684_v41  ;;  %v1802_v59 = vpack.c.bf16 %v759_v55, %v686_v45  ;;  %v1943_v60 = vpop.permute.xlu1 %1942  ;;  %v1800_v61 = vpack.c.bf16 %v760_v56, %v687_v48  ;;  %v1998_v45 = vpop.permute.xlu0 %1997  ;;  %v1989_v54 = vunpack.i.l.bf16 %v1988_v28 }
 0x399   : > { %v1945_v62 = vunpack.i.h.bf16 %v1943_v60  ;;  %v1944_v63 = vunpack.i.l.bf16 %v1943_v60  ;;  %v1050_v41 = vsel %vm1048_vm13, %v1979_v22, %v1980_v21  ;;  %v2000_v55 = vunpack.i.h.bf16 %v1998_v45 }
 0x39a   : > { %1172 = vrot.lane.b32.xlu1 %v2290_v38, %s2128_s8  ;;  %1289 = vrot.lane.b32.xlu0 %v2312_v57, %s2122_s22  ;;  %v1999_v56 = vunpack.i.l.bf16 %v1998_v45 }
 0x39b   : > { %1787 = vmatpush1.bf16.msra.mxu0 %v1786_v58  ;;  %1801 = vmatprep.subr.bf16.mxu1 %v1800_v61  ;;  %v831_v2 = vsel %vm829_vm12, %v1944_v63, %v1945_v62 }
 0x39c   : > { %v1953_v3 = vpop.permute.xlu1 %1952  ;;  %1803 = vmatpush1.bf16.msra.mxu1 %v1802_v59  ;;  %v1788_v4 = vpack.c.bf16 %v904_v0, %v831_v2 }
 0x39d   : > { %v1955_v6 = vunpack.i.h.bf16 %v1953_v3  ;;  %v1954_v7 = vunpack.i.l.bf16 %v1953_v3 }
 0x39e   : > { %2007 = vrot.lane.b32.xlu0 %v2321_v1, %s2120_s18  ;;  %1281 = vrot.lane.b32.xlu1 %v2312_v57, %s2120_s18 }
 0x39f   : > { %1789 = vmatprep.subr.bf16.mxu0 %v1788_v4  ;;  %v830_v19 = vsel %vm829_vm12, %v1954_v7, %v1944_v63  ;;  %v832_v23 = vsel %vm829_vm12, %v1960_v8, %v1955_v6  ;;  %v833_v26 = vsel %vm829_vm12, %v1955_v6, %v1959_v9 }
 0x3a0   : > { %v1963_v20 = vpop.permute.xlu1 %1962 }
 0x3a1   : > { %v1965_v24 = vunpack.i.h.bf16 %v1963_v20  ;;  %v1964_v25 = vunpack.i.l.bf16 %v1963_v20 }
 0x3a2   : > { %1407 = vrot.lane.b32.xlu0 %v2339_v18, %s2120_s18  ;;  %1297 = vrot.lane.b32.xlu1 %v2312_v57, %s2128_s8 }
 0x3a3   : > { %v903_v29 = vsel %vm902_vm11, %v1964_v25, %v1949_v44  ;;  %v905_v30 = vsel %vm902_vm11, %v1970_v16, %v1965_v24  ;;  %v906_v31 = vsel %vm902_vm11, %v1965_v24, %v1969_v17 }
 0x3a4   : > { %v1790_v32 = vpack.c.bf16 %v903_v29, %v830_v19  ;;  %v1806_v33 = vpack.c.bf16 %v905_v30, %v832_v23  ;;  %v1973_v34 = vpop.permute.xlu1 %1972  ;;  %v1804_v35 = vpack.c.bf16 %v906_v31, %v833_v26 }
 0x3a5   : > { %v1975_v36 = vunpack.i.h.bf16 %v1973_v34  ;;  %v1974_v37 = vunpack.i.l.bf16 %v1973_v34 }
 0x3a6   : > { %1423 = vrot.lane.b32.xlu0 %v2339_v18, %s2128_s8  ;;  %2012 = vrot.lane.b32.xlu1 %v2352_v27, %s2120_s18 }
 0x3a7   : > { %1791 = vmatpush1.bf16.msra.mxu0 %v1790_v32  ;;  %1805 = vmatprep.subr.bf16.mxu1 %v1804_v35  ;;  %v977_v42 = vsel %vm975_vm14, %v1974_v37, %v1975_v36 }
 0x3a8   : > { %v1983_v44 = vpop.permute.xlu1 %1982  ;;  %1807 = vmatpush1.bf16.msra.mxu1 %v1806_v33  ;;  %v1792_v46 = vpack.c.bf16 %v1050_v41, %v977_v42 }
 0x3a9   : > { %v1985_v47 = vunpack.i.h.bf16 %v1983_v44  ;;  %v1984_v48 = vunpack.i.l.bf16 %v1983_v44 }
 0x3aa   : > { %1541 = vrot.lane.b32.xlu0 %v2364_v43, %s2122_s22  ;;  %1415 = vrot.lane.b32.xlu1 %v2339_v18, %s2122_s22 }
 0x3ab   : > { %1793 = vmatprep.subr.bf16.mxu0 %v1792_v46  ;;  %v976_v38 = vsel %vm975_vm14, %v1984_v48, %v1974_v37  ;;  %v978_v59 = vsel %vm975_vm14, %v1990_v49, %v1985_v47  ;;  %v979_v62 = vsel %vm975_vm14, %v1985_v47, %v1989_v54  ;;  %v2470_v47 = vld [vmem:[%s2609_s6] sm:$0xff] }
 0x3ac   : > { %v1993_v58 = vpop.permute.xlu1 %1992 }
 0x3ad   : > { %v1995_v60 = vunpack.i.h.bf16 %v1993_v58  ;;  %v1994_v61 = vunpack.i.l.bf16 %v1993_v58 }
 0x3ae   : > { %1097 = vrot.lane.b32.xlu0 %v2207_v39, %s2127_s30  ;;  %1533 = vrot.lane.b32.xlu1 %v2364_v43, %s2120_s18  ;;  %v2386_v39 = vpop.permute.xlu0 %1099 }
 0x3af   : > { %v1049_v63 = vsel %vm1048_vm13, %v1994_v61, %v1979_v22  ;;  %v1051_v0 = vsel %vm1048_vm13, %v2000_v55, %v1995_v60  ;;  %v1052_v2 = vsel %vm1048_vm13, %v1995_v60, %v1999_v56 }
 0x3b0   : > { %v1794_v3 = vpack.c.bf16 %v1049_v63, %v976_v38  ;;  %v1810_v4 = vpack.c.bf16 %v1051_v0, %v978_v59  ;;  %v1808_v5 = vpack.c.bf16 %v1052_v2, %v979_v62  ;;  %v2380_v6 = vpop.permute.xlu1 %2002  ;;  %v2481_v59 = vld [vmem:[%s2609_s6 + $0x8] sm:$0xff]  ;;  %v2491_v0 = vld [vmem:[%s2609_s6 + $0x10] sm:$0xff] }
 0x3b1   : > { %v2005_v19 = vunpack.i.h.bf16 %v2380_v6  ;;  %v2004_v20 = vunpack.i.l.bf16 %v2380_v6 }
 0x3b2   : > { %1107 = vrot.lane.b32.xlu0 %v2231_v52, %s2127_s30  ;;  %1549 = vrot.lane.b32.xlu1 %v2364_v43, %s2128_s8 }
 0x3b3   : > { %1795 = vmatpush1.bf16.msra.mxu0 %v1794_v3  ;;  %1809 = vmatprep.subr.bf16.mxu1 %v1808_v5 }
 0x3b4   : > { %1811 = vmatpush1.bf16.msra.mxu1 %v1810_v4  ;;  %v1102_v7 = vpop.permute.xlu1 %1101 }
 0x3b5   : > { %v1123_v8 = vsel %vm1121_vm15, %v2386_v39, %v1102_v7 }
 0x3b6   : > { %2017 = vrot.lane.b32.xlu0 %v2278_v15, %s2122_s22  ;;  %1105 = vrot.lane.b32.xlu1 %v2210_v40, %s2127_s30 }
 0x3b7   : > { %1217 = vmatprep.subr.mxu0 %v1123_v8 }
 0x3ba   : > { %2027 = vrot.lane.b32.xlu0 %v2321_v1, %s2122_s22  ;;  %1103 = vrot.lane.b32.xlu1 %v2228_v51, %s2127_s30 }
 0x3be   : > { %2037 = vrot.lane.b32.xlu0 %v2321_v1, %s2121_s21  ;;  %2022 = vrot.lane.b32.xlu1 %v2278_v15, %s2121_s21 }
 0x3c2   : > { %2047 = vrot.lane.b32.xlu0 %v2278_v15, %s2124_s25  ;;  %2032 = vrot.lane.b32.xlu1 %v2352_v27, %s2122_s22 }
 0x3c6   : > { %2057 = vrot.lane.b32.xlu0 %v2321_v1, %s2124_s25  ;;  %2042 = vrot.lane.b32.xlu1 %v2352_v27, %s2121_s21 }
 0x3c7   : > { %s1846_s9 = spop %1845 }
 0x3c8   : > { %v1149_v46 = vstv %s1846_s9 }
 0x3c9   : > { %v1151_v62 = vmul.f32 %v1149_v46, %v2470_v47 }
 0x3ca   : > { %2067 = vrot.lane.b32.xlu0 %v2321_v1, %s2123_s23  ;;  %2052 = vrot.lane.b32.xlu1 %v2278_v15, %s2123_s23 }
 0x3ce   : > { %2077 = vrot.lane.b32.xlu0 %v2278_v15, %s2126_s29  ;;  %2062 = vrot.lane.b32.xlu1 %v2352_v27, %s2124_s25 }
 0x3d2   : > { %2087 = vrot.lane.b32.xlu0 %v2321_v1, %s2126_s29  ;;  %2072 = vrot.lane.b32.xlu1 %v2352_v27, %s2123_s23 }
 0x3d6   : > { %2097 = vrot.lane.b32.xlu0 %v2321_v1, %s2125_s28  ;;  %2082 = vrot.lane.b32.xlu1 %v2278_v15, %s2125_s28 }
 0x3da   : > { %2092 = vrot.lane.b32.xlu1 %v2352_v27, %s2126_s29  ;;  %1111 = vrot.lane.b32.xlu0 %v2269_v12, %s2127_s30 }
 0x3de   : > { %2102 = vrot.lane.b32.xlu1 %v2352_v27, %s2125_s28  ;;  %1109 = vrot.lane.b32.xlu0 %v2303_v50, %s2127_s30 }
 0x3e2   : > { %1113 = vrot.lane.b32.xlu1 %v2272_v14, %s2127_s30  ;;  %1119 = vrot.lane.b32.xlu0 %v2336_v11, %s2127_s30 }
 0x3e6   : > { %1117 = vrot.lane.b32.xlu1 %v2306_v53, %s2127_s30 }
 0x3ea   : > { %1115 = vrot.lane.b32.xlu1 %v2333_v10, %s2127_s30 }
 0x408   : > { %v1164_v40 = vpop.permute.xlu1 %1163  ;;  %v1155_v51 = vpop.permute.xlu0 %1154 }
 0x409   : > { %1847 = vpush %v1155_v51 }
 0x40a   : > { %1849 = vpush %v1164_v40  ;;  %v2508_v40 = vld [vmem:[%s2609_s6 + $0x18] sm:$0xff] }
 0x40c   : > { %v1173_v52 = vpop.permute.xlu1 %1172  ;;  %v1290_v15 = vpop.permute.xlu0 %1289 }
 0x40d   : > { %1851 = vpush %v1173_v52 }
 0x40e   : > { %1853 = vpush %v2312_v57  ;;  %v616_v57 = vsel %vm610_vm8, %v2004_v20, %v2005_v19 }
 0x40f   : > { %v1812_v25 = vpack.c.bf16 %v616_v57, %v2269_v12 }
 0x410   : > { %v1282_v1 = vpop.permute.xlu1 %1281  ;;  %v2443_v14 = vpop.permute.xlu0 %2007 }
 0x411   : > { %1855 = vpush %v1282_v1  ;;  %v2010_v28 = vunpack.i.h.bf16 %v2443_v14  ;;  %v2009_v44 = vunpack.i.l.bf16 %v2443_v14 }
 0x412   : > { %1857 = vpush %v1290_v15 }
 0x413   : > { %v615_v60 = vsel %vm610_vm8, %v2009_v44, %v2004_v20 }
 0x414   : > { %v1298_v9 = vpop.permute.xlu1 %1297  ;;  %v1408_v11 = vpop.permute.xlu0 %1407  ;;  %v1814_v7 = vpack.c.bf16 %v615_v60, %v2303_v50 }
 0x415   : > { %1859 = vpush %v1298_v9 }
 0x416   : > { %1861 = vpush %v2339_v18 }
 0x417   : > { %1863 = vpush %v1408_v11 }
 0x418   : > { %v2013_v16 = vpop.permute.xlu1 %2012  ;;  %v1424_v17 = vpop.permute.xlu0 %1423 }
 0x419   : > { %v2014_v29 = vunpack.i.l.bf16 %v2013_v16  ;;  %v2015_v45 = vunpack.i.h.bf16 %v2013_v16 }
 0x41b   : > { %v618_v33 = vsel %vm610_vm8, %v2010_v28, %v2014_v29  ;;  %v2485_v61 = vsel %vm610_vm8, %v2015_v45, %v2010_v28 }
 0x41c   : > { %v1416_v21 = vpop.permute.xlu1 %1415  ;;  %v1542_v22 = vpop.permute.xlu0 %1541  ;;  %v1828_v36 = vpack.c.bf16 %v618_v33, %v2306_v53  ;;  %v1830_v8 = vpack.c.bf16 %v2485_v61, %v2333_v10 }
 0x41d   : > { %1865 = vpush %v1416_v21 }
 0x41e   : > { %1867 = vpush %v1424_v17 }
 0x41f   : > { %1869 = vpush %v2364_v43 }
 0x420   : > { %v1534_v23 = vpop.permute.xlu1 %1533  ;;  %v1098_v24 = vpop.permute.xlu0 %1097 }
 0x421   : > { %v1122_v18 = vsel %vm1121_vm15, %v1098_v24, %v2386_v39  ;;  %1871 = vpush %v1534_v23 }
 0x422   : > { %1873 = vpush %v1542_v22  ;;  %1218 = vmatpush1.msra.mxu0 %v1122_v18 }
 0x423   : > { %1813 = vmatprep.subr.bf16.mxu0 %v1812_v25 }
 0x424   : > { %v1550_v26 = vpop.permute.xlu1 %1549  ;;  %v1108_v27 = vpop.permute.xlu0 %1107 }
 0x425   : > { %1875 = vpush %v1550_v26 }
 0x428   : > { %v1106_v30 = vpop.permute.xlu1 %1105  ;;  %v2018_v31 = vpop.permute.xlu0 %2017 }
 0x429   : > { %v1125_v32 = vsel %vm1121_vm15, %v1106_v30, %v1108_v27  ;;  %v2019_v53 = vunpack.i.l.bf16 %v2018_v31  ;;  %v2020_v38 = vunpack.i.h.bf16 %v2018_v31 }
 0x42a   : > { %1342 = vmatprep.subr.mxu1 %v1125_v32 }
 0x42b   : > { %v689_v51 = vsel %vm683_vm10, %v2019_v53, %v2020_v38 }
 0x42c   : > { %v1104_v34 = vpop.permute.xlu1 %1103  ;;  %v2456_v35 = vpop.permute.xlu0 %2027 }
 0x42d   : > { %v1124_v12 = vsel %vm1121_vm15, %v1104_v34, %v1106_v30  ;;  %v2029_v48 = vunpack.i.l.bf16 %v2456_v35  ;;  %v2030_v50 = vunpack.i.h.bf16 %v2456_v35 }
 0x42e   : > { %1343 = vmatpush1.msra.mxu1 %v1124_v12 }
 0x42f   : > { %1829 = vmatprep.subr.bf16.mxu1 %v1828_v36  ;;  %v2494_v2 = vsel %vm683_vm10, %v2029_v48, %v2019_v53 }
 0x430   : > { %v2023_v37 = vpop.permute.xlu1 %2022  ;;  %v2460_v41 = vpop.permute.xlu0 %2037 }
 0x431   : > { %v2024_v49 = vunpack.i.l.bf16 %v2023_v37  ;;  %v2039_v54 = vunpack.i.l.bf16 %v2460_v41  ;;  %v2025_v58 = vunpack.i.h.bf16 %v2023_v37  ;;  %v2040_v11 = vunpack.i.h.bf16 %v2460_v41 }
 0x433   : > { %v2497_v3 = vsel %vm756_vm9, %v2039_v54, %v2024_v49  ;;  %v762_v52 = vsel %vm756_vm9, %v2024_v49, %v2025_v58 }
 0x434   : > { %v2462_v42 = vpop.permute.xlu1 %2032  ;;  %v2464_v43 = vpop.permute.xlu0 %2047  ;;  %v1818_v16 = vpack.c.bf16 %v2497_v3, %v2494_v2  ;;  %v1816_v26 = vpack.c.bf16 %v762_v52, %v689_v51 }
 0x435   : > { %v2050_v15 = vunpack.i.h.bf16 %v2464_v43  ;;  %v2049_v1 = vunpack.i.l.bf16 %v2464_v43  ;;  %v2034_v24 = vunpack.i.l.bf16 %v2462_v42  ;;  %v2035_v27 = vunpack.i.h.bf16 %v2462_v42 }
 0x437   : > { %v835_v30 = vsel %vm829_vm12, %v2049_v1, %v2050_v15  ;;  %v691_v48 = vsel %vm683_vm10, %v2030_v50, %v2034_v24 }
 0x438   : > { %v2474_v55 = vpop.permute.xlu1 %2042  ;;  %v2476_v56 = vpop.permute.xlu0 %2057 }
 0x439   : > { %v2059_v18 = vunpack.i.l.bf16 %v2476_v56  ;;  %v2044_v28 = vunpack.i.l.bf16 %v2474_v55  ;;  %v2045_v45 = vunpack.i.h.bf16 %v2474_v55  ;;  %v2060_v46 = vunpack.i.h.bf16 %v2476_v56 }
 0x43a   : > { %s1848_s14 = spop %1847 }
 0x43b   : > { %v1157_v63 = vstv %s1848_s14  ;;  %s1850_s17 = spop %1849  ;;  %v834_v53 = vsel %vm829_vm12, %v2059_v18, %v2049_v1  ;;  %v764_v55 = vsel %vm756_vm9, %v2040_v11, %v2044_v28  ;;  %v763_v1 = vsel %vm756_vm9, %v2045_v45, %v2040_v11 }
 0x43c   : > { %v1159_v4 = vmul.f32 %v2481_v59, %v1157_v63  ;;  %v1166_v5 = vstv %s1850_s17  ;;  %v2053_v6 = vpop.permute.xlu1 %2052  ;;  %v2500_v39 = vpop.permute.xlu0 %2067 }
 0x43d   : > { %v1168_v9 = vmul.f32 %v2491_v0, %v1166_v5  ;;  %v2055_v20 = vunpack.i.h.bf16 %v2053_v6  ;;  %v2054_v21 = vunpack.i.l.bf16 %v2053_v6  ;;  %v2069_v31 = vunpack.i.l.bf16 %v2500_v39 }
 0x43e   : > { %v1160_v14 = vadd.f32 %v1159_v4, %v1151_v62  ;;  %s1852_s20 = spop %1851  ;;  %v2070_v49 = vunpack.i.h.bf16 %v2500_v39 }
 0x43f   : > { %v1175_v17 = vstv %s1852_s20  ;;  %s1854_s21 = spop %1853  ;;  %v908_v44 = vsel %vm902_vm11, %v2054_v21, %v2055_v20  ;;  %v907_v58 = vsel %vm902_vm11, %v2069_v31, %v2054_v21  ;;  %v1832_v21 = vpack.c.bf16 %v764_v55, %v691_v48 }
 0x440   : > { %v1169_v19 = vadd.f32 %v1168_v9, %v1160_v14  ;;  %v1177_v22 = vmul.f32 %v2508_v40, %v1175_v17  ;;  %v2520_v57 = vpop.permute.xlu1 %2062  ;;  %v2078_v23 = vpop.permute.xlu0 %2077  ;;  %v1277_v25 = vstv %s1854_s21  ;;  %v1820_v62 = vpack.c.bf16 %v908_v44, %v835_v30 }
 0x441   : > { %v2080_v32 = vunpack.i.h.bf16 %v2078_v23  ;;  %v2079_v33 = vunpack.i.l.bf16 %v2078_v23  ;;  %v1279_v12 = vmul.f32 %v1277_v25, %v2470_v47  ;;  %v2064_v14 = vunpack.i.l.bf16 %v2520_v57 }
 0x442   : > { %v1178_v29 = vadd.f32 %v1177_v22, %v1169_v19  ;;  %s1856_s22 = spop %1855  ;;  %v1822_v19 = vpack.c.bf16 %v907_v58, %v834_v53  ;;  %v2065_v28 = vunpack.i.h.bf16 %v2520_v57 }
 0x443   : > { %v1284_v34 = vstv %s1856_s22  ;;  %s1858_s23 = spop %1857  ;;  %v981_v63 = vsel %vm975_vm14, %v2079_v33, %v2080_v32  ;;  %v837_v42 = vsel %vm829_vm12, %v2060_v46, %v2064_v14 }
 0x444   : > { %v1286_v36 = vmul.f32 %v2481_v59, %v1284_v34  ;;  %v1292_v37 = vstv %s1858_s23  ;;  %v2073_v41 = vpop.permute.xlu1 %2072  ;;  %v2530_v43 = vpop.permute.xlu0 %2087  ;;  %1743 = vmatmul.mubr.msk.f32.vlgmr.msra.gmra.mrb[2].mxu0 %vm1197_vm0, %v1178_v29 }
 0x445   : > { %1815 = vmatpush1.bf16.msra.mxu0 %v1814_v7  ;;  %1516 = vmatprep.mubr.f32.mxu0 %v2118_v13  ;;  %v1294_v38 = vmul.f32 %v2491_v0, %v1292_v37  ;;  %v2074_v3 = vunpack.i.l.bf16 %v2073_v41  ;;  %v2089_v4 = vunpack.i.l.bf16 %v2530_v43  ;;  %v2075_v9 = vunpack.i.h.bf16 %v2073_v41 }
 0x446   : > { %v1287_v54 = vadd.f32 %v1286_v36, %v1279_v12  ;;  %1817 = vmatprep.subr.bf16.mxu0 %v1816_v26  ;;  %s1860_s25 = spop %1859  ;;  %v690_v26 = vsel %vm683_vm10, %v2035_v27, %v2030_v50  ;;  %v2090_v35 = vunpack.i.h.bf16 %v2530_v43  ;;  %v836_v37 = vsel %vm829_vm12, %v2065_v28, %v2060_v46 }
 0x447   : > { %v1300_v60 = vstv %s1860_s25  ;;  %s1862_s28 = spop %1861  ;;  %v980_v23 = vsel %vm975_vm14, %v2089_v4, %v2079_v33  ;;  %v910_v30 = vsel %vm902_vm11, %v2070_v49, %v2074_v3  ;;  %v1834_v31 = vpack.c.bf16 %v763_v1, %v690_v26 }
 0x448   : > { %v1295_v2 = vadd.f32 %v1294_v38, %v1287_v54  ;;  %v1302_v5 = vmul.f32 %v2508_v40, %v1300_v60  ;;  %s1864_s29 = spop %1863  ;;  %v2083_v6 = vpop.permute.xlu1 %2082  ;;  %v2548_v39 = vpop.permute.xlu0 %2097  ;;  %v1403_v7 = vstv %s1862_s28  ;;  %v909_v32 = vsel %vm902_vm11, %v2075_v9, %v2070_v49 }
 0x449   : > { %v1410_v51 = vstv %s1864_s29  ;;  %v2085_v52 = vunpack.i.h.bf16 %v2083_v6  ;;  %v2084_v15 = vunpack.i.l.bf16 %v2083_v6  ;;  %1819 = vmatpush1.bf16.msra.mxu0 %v1818_v16  ;;  %v2099_v20 = vunpack.i.l.bf16 %v2548_v39 }
 0x44a   : > { %v1303_v17 = vadd.f32 %v1302_v5, %v1295_v2  ;;  %1821 = vmatprep.subr.bf16.mxu0 %v1820_v62  ;;  %v1405_v24 = vmul.f32 %v1403_v7, %v2470_v47  ;;  %v1412_v18 = vmul.f32 %v2481_v59, %v1410_v51  ;;  %v2100_v50 = vunpack.i.h.bf16 %v2548_v39 }
 0x44b   : > { %v1054_v22 = vsel %vm1048_vm13, %v2084_v15, %v2085_v52  ;;  %v1053_v29 = vsel %vm1048_vm13, %v2099_v20, %v2084_v15  ;;  %v1836_v12 = vpack.c.bf16 %v910_v30, %v837_v42  ;;  %v1838_v45 = vpack.c.bf16 %v909_v32, %v836_v37 }
 0x44c   : > { %v2093_v16 = vpop.permute.xlu1 %2092  ;;  %1747 = vmatmul.mubr.msk.f32.vlgmr.msra.gmra.mrb[2].mxu1 %vm1197_vm0, %v1303_v17  ;;  %v1824_v11 = vpack.c.bf16 %v1054_v22, %v981_v63  ;;  %v1112_v25 = vpop.permute.xlu0 %1111  ;;  %v1826_v57 = vpack.c.bf16 %v1053_v29, %v980_v23  ;;  %v1413_v61 = vadd.f32 %v1412_v18, %v1405_v24 }
 0x44d   : > { %1823 = vmatpush1.bf16.msra.mxu0 %v1822_v19  ;;  %1831 = vmatpush1.bf16.msra.mxu1 %v1830_v8  ;;  %v2094_v27 = vunpack.i.l.bf16 %v2093_v16  ;;  %v2095_v53 = vunpack.i.h.bf16 %v2093_v16 }
 0x44e   : > { %1833 = vmatprep.subr.bf16.mxu1 %v1832_v21  ;;  %s1866_s30 = spop %1865  ;;  %1825 = vmatprep.subr.bf16.mxu0 %v1824_v11 }
 0x44f   : > { %v1418_v10 = vstv %s1866_s30  ;;  %s1868_s8 = spop %1867  ;;  %1642 = vmatprep.mubr.f32.mxu1 %v2118_v13  ;;  %v983_v54 = vsel %vm975_vm14, %v2090_v35, %v2094_v27  ;;  %v982_v2 = vsel %vm975_vm14, %v2095_v53, %v2090_v35 }
 0x450   : > { %v1420_v8 = vmul.f32 %v2491_v0, %v1418_v10  ;;  %v1426_v33 = vstv %s1868_s8  ;;  %s1870_s9 = spop %1869  ;;  %v2103_v34 = vpop.permute.xlu1 %2102  ;;  %v1110_v36 = vpop.permute.xlu0 %1109 }
 0x451   : > { %v1529_v41 = vstv %s1870_s9  ;;  %v2105_v43 = vunpack.i.h.bf16 %v2103_v34  ;;  %v2104_v44 = vunpack.i.l.bf16 %v2103_v34  ;;  %1827 = vmatpush1.bf16.msra.mxu0 %v1826_v57  ;;  %1835 = vmatpush1.bf16.msra.mxu1 %v1834_v31  ;;  %v1428_v48 = vmul.f32 %v2508_v40, %v1426_v33 }
 0x452   : > { %v1421_v13 = vadd.f32 %v1420_v8, %v1413_v61  ;;  %1837 = vmatprep.subr.bf16.mxu1 %v1836_v12  ;;  %s1872_s10 = spop %1871  ;;  %v1531_v46 = vmul.f32 %v1529_v41, %v2470_v47  ;;  %v1126_v5 = vsel %vm1121_vm15, %v1110_v36, %v1112_v25 }
 0x453   : > { %v1536_v49 = vstv %s1872_s10  ;;  %s1874_s11 = spop %1873  ;;  %v1056_v56 = vsel %vm1048_vm13, %v2100_v50, %v2104_v44  ;;  %v1055_v38 = vsel %vm1048_vm13, %v2105_v43, %v2100_v50 }
 0x454   : > { %v1538_v55 = vmul.f32 %v2481_v59, %v1536_v49  ;;  %v1544_v58 = vstv %s1874_s11  ;;  %v1114_v60 = vpop.permute.xlu1 %1113  ;;  %v1840_v63 = vpack.c.bf16 %v1056_v56, %v983_v54  ;;  %v1429_v3 = vadd.f32 %v1428_v48, %v1421_v13  ;;  %v1120_v6 = vpop.permute.xlu0 %1119 }
 0x455   : > { %1839 = vmatpush1.bf16.msra.mxu1 %v1838_v45  ;;  %v1127_v62 = vsel %vm1121_vm15, %v1112_v25, %v1114_v60  ;;  %v1842_v47 = vpack.c.bf16 %v1055_v38, %v982_v2  ;;  %v1546_v39 = vmul.f32 %v2491_v0, %v1544_v58 }
 0x456   : > { %v1539_v4 = vadd.f32 %v1538_v55, %v1531_v46  ;;  %1468 = vmatprep.subr.mxu0 %v1127_v62  ;;  %s1876_s12 = spop %1875  ;;  %1841 = vmatprep.subr.bf16.mxu1 %v1840_v63 }
 0x457   : > { %v1552_v59 = vstv %s1876_s12  ;;  %1469 = vmatpush1.msra.mxu0 %v1126_v5 }
 0x458   : > { %v1118_v7 = vpop.permute.xlu1 %1117  ;;  %1753 = vmatmul.mubr.msk.f32.vlgmr.msra.gmra.mrb[4].mxu0 %vm1197_vm0, %v1429_v3  ;;  %v1547_v51 = vadd.f32 %v1546_v39, %v1539_v4  ;;  %v1554_v52 = vmul.f32 %v2508_v40, %v1552_v59 }
 0x459   : > { %1843 = vmatpush1.bf16.msra.mxu1 %v1842_v47  ;;  %v1129_v15 = vsel %vm1121_vm15, %v1118_v7, %v1120_v6 }
 0x45a   : > { %1594 = vmatprep.subr.mxu1 %v1129_v15  ;;  %v1555_v14 = vadd.f32 %v1554_v52, %v1547_v51 }
 0x45c   : > { %v1116_v1 = vpop.permute.xlu1 %1115 }
 0x45d   : > { %v1128_v9 = vsel %vm1121_vm15, %v1116_v1, %v1118_v7 }
 0x45e   : > { %1595 = vmatpush1.msra.mxu1 %v1128_v9 }
 0x45f   : > { %1759 = vmatmul.mubr.msk.f32.vlgmr.msra.gmra.mrb[4].mxu1 %vm1197_vm0, %v1555_v14 }
 0x517   : > { %v1267_v0 = vpop.f32.mrb[2].mxu0 }
 0x518   : > { %1272 = vst [vmem:[%s310_s15] sm:$0xff] %v1267_v0  ;;  %v1269_v17 = vpop.f32.mrb[3].mxu0 }
 0x519   : > { %1273 = vst [vmem:[%s310_s15 + $0x8] sm:$0xff] %v1269_v17 }
 0x51f   : > { %v1392_v40 = vpop.f32.mrb[2].mxu1 }
 0x520   : > { %1748 = vst [vmem:[%s310_s15 + $0x10] sm:$0xff] %v1392_v40  ;;  %v1394_v19 = vpop.f32.mrb[3].mxu1 }
 0x521   : > { %1749 = vst [vmem:[%s310_s15 + $0x18] sm:$0xff] %v1394_v19 }
 0x52b   : > { %v1518_v20 = vpop.f32.mrb[4].mxu0 }
 0x52c   : > { %1754 = vst [vmem:[%s310_s15 + $0x20] sm:$0xff] %v1518_v20  ;;  %v1520_v21 = vpop.f32.mrb[5].mxu0 }
 0x52d   : > { %1755 = vst [vmem:[%s310_s15 + $0x28] sm:$0xff] %v1520_v21 }
 0x532   : > { %v1644_v22 = vpop.f32.mrb[4].mxu1 }
 0x533   : > { %1760 = vst [vmem:[%s310_s15 + $0x30] sm:$0xff] %v1644_v22  ;;  %v1646_v23 = vpop.f32.mrb[5].mxu1 }
 0x534   : > { %1761 = vst [vmem:[%s310_s15 + $0x38] sm:$0xff] %v1646_v23 }
 0x535 PF: > { %s17_s24 = sadd.s32 1, %s2116_s24  }
 0x536   : > { %p14_p4 = scmp.ge.s32.totalorder %s17_s24, 4  }
 0x538   :  { %16 = sbr.rel (!%p14_p4) target bundleno = 1 (0x1), region = 90 }

</bundles_post_ra>
